<compile_context>
chip_gen: v7x
topology: tpu7x:2x2x1
jax: 0.10.0
libtpu: 0.0.40
codegen_flags: <defaults>
</compile_context>

<pallas_src>
import jax
import jax.numpy as jnp
from jax.experimental import pallas as pl
from jax.experimental.pallas import tpu as pltpu

_SINGLE_BLOCK_MAX_BYTES = 512 * 1024   # <= 512 KiB -> one block, no grid
_TARGET_BLOCK_BYTES = 1 << 20          # ~1 MiB blocks on the tiled path


def _affine_kernel(w_ref, b_ref, x_ref, o_ref):
    # w_ref, b_ref: SMEM (1,) f32 scalars.  x_ref/o_ref: VMEM (rows, lanes).
    w = w_ref[0]
    b = b_ref[0]
    o_ref[...] = (x_ref[...] * w + b).astype(o_ref.dtype)  # VPU FMA, scalar bcast


def _round_up(a, m):
    return ((a + m - 1) // m) * m


def _choose_lanes(n):
    """Widest lane count that divides n (-> zero padding), else minimal pad."""
    for c in (2048, 1024, 512, 256, 128):
        if n >= c and n % c == 0:
            return c, 0
    c = 128 if n < 4096 else 512
    return c, (-n) % c


def linear_pallas(x, weight, bias):
    """x: (N, 1), weight: (1, 1), bias: (1,)  ->  (N, 1).

    Matches torch.nn.Linear(1, 1): y = x @ W^T + b == x * w + b.
    """
    n, in_f = x.shape
    out_f = weight.shape[0]
    assert in_f == 1 and out_f == 1

    # Keep w/b in f32 SMEM; compute promotes to f32, result cast to x.dtype.
    w = weight.reshape(1).astype(jnp.float32)
    b = bias.reshape(1).astype(jnp.float32)

    x_flat = x.reshape(n)
    lanes, pad = _choose_lanes(n)
    if pad:
        x_flat = jnp.pad(x_flat, (0, pad))
    rows = (n + pad) // lanes
    x2d = x_flat.reshape(rows, lanes)

    itemsize = jnp.dtype(x.dtype).itemsize
    total_bytes = rows * lanes * itemsize

    smem_spec = pl.BlockSpec(memory_space=pltpu.MemorySpace.SMEM)
    vmem_spec = pl.BlockSpec(memory_space=pltpu.MemorySpace.VMEM)

    if total_bytes <= _SINGLE_BLOCK_MAX_BYTES:
        # --- small path: one full-array block, no grid machinery ---
        y2d = pl.pallas_call(
            _affine_kernel,
            out_shape=jax.ShapeDtypeStruct((rows, lanes), x.dtype),
            in_specs=[smem_spec, smem_spec, vmem_spec],
            out_specs=vmem_spec,
        )(w, b, x2d)
    else:
        # --- streaming path: ~1 MiB lane-dense row tiles, >= 2 parallel blocks ---
        block_rows = min(
            _TARGET_BLOCK_BYTES // (lanes * itemsize),   # ~1 MiB per block
            _round_up(pl.cdiv(rows, 2), 8),              # ensure >= 2 blocks (v7x)
        )
        block_rows = int(max(8, block_rows))
        grid = (pl.cdiv(rows, block_rows),)
        y2d = pl.pallas_call(
            _affine_kernel,
            out_shape=jax.ShapeDtypeStruct((rows, lanes), x.dtype),
            grid=grid,
            in_specs=[
                smem_spec,
                smem_spec,
                pl.BlockSpec((block_rows, lanes), lambda i: (i, 0)),
            ],
            out_specs=pl.BlockSpec((block_rows, lanes), lambda i: (i, 0)),
            compiler_params=pltpu.CompilerParams(
                dimension_semantics=("parallel",)),
        )(w, b, x2d)

    y_flat = y2d.reshape(-1)
    if pad:
        y_flat = y_flat[:n]
    return y_flat.reshape(n, out_f)


if __name__ == "__main__":
    key = jax.random.PRNGKey(0)
    kx, kw, kb = jax.random.split(key, 3)

    weight = jax.random.uniform(kw, (1, 1), dtype=jnp.float32, minval=-1.0, maxval=1.0)
    bias = jax.random.uniform(kb, (1,), dtype=jnp.float32, minval=-1.0, maxval=1.0)

    # Primary small shape consistent with nn.Linear(1, 1): batch=8, feature=1.
    # Additional sizes exercise the zero-pad path and the tiled/masked path.
    for N in (8, 8192, 140000):
        x = jax.random.normal(kx, (N, 1), dtype=jnp.float32)
        y = linear_pallas(x, weight, bias)
        jax.block_until_ready(y)

        y_ref = x @ weight.T + bias  # pure-JAX reference (== torch Linear)
        assert y.shape == (N, 1)
        assert jnp.allclose(y, y_ref, atol=1e-5, rtol=1e-5), f"mismatch at N={N}"

    print("KERNEL_OK")
</pallas_src>

<mosaic_0001>
module attributes {stable_mosaic.version = 11 : i64} {
  func.func @_affine_kernel(%arg0: memref<1xf32, #tpu.memory_space<smem>>, %arg1: memref<1xf32, #tpu.memory_space<smem>>, %arg2: memref<1x128xf32, #tpu.memory_space<vmem>>, %arg3: memref<1x128xf32, #tpu.memory_space<vmem>>) attributes {dimension_semantics = [], scalar_prefetch = 0 : i64, scratch_operands = 0 : i64, tpu.core_type = #tpu.core_type<tc>} {
    %c0 = arith.constant 0 : index
    %0 = memref.load %arg0[%c0] : memref<1xf32, #tpu.memory_space<smem>>
    %c0_0 = arith.constant 0 : index
    %1 = memref.load %arg1[%c0_0] : memref<1xf32, #tpu.memory_space<smem>>
    %c0_1 = arith.constant 0 : index
    %c0_2 = arith.constant 0 : index
    %2 = vector.load %arg2[%c0_1, %c0_2] : memref<1x128xf32, #tpu.memory_space<vmem>>, vector<1x128xf32>
    %3 = vector.broadcast %0 : f32 to vector<1x128xf32>
    %4 = arith.mulf %2, %3 : vector<1x128xf32>
    %5 = vector.broadcast %1 : f32 to vector<1x128xf32>
    %6 = arith.addf %4, %5 : vector<1x128xf32>
    %c0_3 = arith.constant 0 : index
    %c0_4 = arith.constant 0 : index
    %7 = vector.load %arg3[%c0_3, %c0_4] : memref<1x128xf32, #tpu.memory_space<vmem>>, vector<1x128xf32>
    tpu.vector_store %arg3[%c0_3, %c0_4], %6 {strides = array<i32>} : memref<1x128xf32, #tpu.memory_space<vmem>>, vector<1x128xf32>,
    return
  }
}

</mosaic_0001>

<bundles_post_ra>
// kernel: tpu_custom_call.1
= control target key start
LH: loop header
LB: loop body
LE: loop exit
PB: predicated region body
PF: predicated region fallthrough
CT: control target
= control target key end

     0   :  { %s106_s0 = inlined_call_operand.<no memory space> [shape: f32[1], index: 0, kind: input, shape index: {}]   ;;  %s107_s1 = inlined_call_operand.<no memory space> [shape: f32[1], index: 1, kind: input, shape index: {}]   ;;  %s108_s2 = inlined_call_operand.vmem [shape: f32[1,128], index: 2, kind: input, shape index: {}]   ;;  %s109_s3 = inlined_call_operand.hbm [shape: f32[1,128], index: 3, kind: output, shape index: {}]  }
   0x1   :  { %v19_v0 = vld [vmem:[%s108_s2] sm:$0x1]  ;;  %v20_v1 = vstv %s106_s0  ;;  %v22_v2 = vstv %s107_s1 }
   0x2   :  { %10 = vsyncpa [#allocation5], 0  ;;  %v21_v3 = vmul.f32 %v20_v1, %v19_v0  ;;  %s64_s18 = smov [#allocation4]  }
   0x3   :  { %s31_s19 = sshll.u32 %s64_s18, 4  ;;  %s32_s19 = int_to_ptr.vmem [resolvable:$true] %s31_s19 }
   0x4   :  { %v23_v4 = vadd.f32 %v22_v2, %v21_v3  ;;  %s40_s20 = scalar_lea.vmem %s32_s19, 16  ;;  %s44_s21 = scalar_lea.vmem %s32_s19, 32 }
   0x5   :  { %p41_p0 = scmp.ne.s32.totalorder %s32_s19, %s40_s20  ;;  %p45_p1 = scmp.lt.s32.totalorder %s32_s19, %s32_s19 }
   0x6   :  { %24 = vst [vmem:[#allocation4] sm:$0x1] %v23_v4  ;;  %p46_p2 = scmp.lt.s32.totalorder %s44_s21, %s40_s20 }
   0x8   :  { %p47_p3 = por %p46_p2, %p45_p1 }
   0xa   :  { %p48_p4 = pnand %p47_p3, %p41_p0 }
   0xc   :  { %51 = shalt.err (!%p48_p4)
}
   0xd   :  { %s52_s22 = scalar_lea.hbm %s109_s3, 16 }
   0xe   :  { %p53_p5 = scmp.ne.s32.totalorder %s109_s3, %s52_s22  ;;  %p56_p6 = scmp.lt.u32.totalorder %s52_s22, %s109_s3 }
  0x10   :  { %p58_p7 = pnand %p56_p6, %p53_p5 }
  0x12   :  { %61 = shalt.err (!%p58_p7)
}
  0x13   :  { %34 = dma.vmem_to_hbm [thread:$0]  %s32_s19, 16, %s109_s3, [#allocation5]  }
  0x14   :  { %62 = dma.done.wait [#allocation5], 16  }
  0x15   :  { %63 = vsyncadd [#allocation5], 4294967280 }
  0x16   :  { %38 = vsyncpa [#allocation5], 1 }

</bundles_post_ra>
